<compile_context>
chip_gen: v6e
topology: v6e:2x2x1
jax: 0.10.0
libtpu: 0.0.40
codegen_flags: <defaults>
</compile_context>

<pallas_src>
import jax
import jax.numpy as jnp
from jax.experimental import pallas as pl
from jax.experimental.pallas import tpu as pltpu


def _uppool2d_kernel(x_ref, wc_ref, b_ref, k_ref, o_ref):
    # x_ref: (N*C_in, H*W)     wc_ref: (N*C_out, N*C_in)    b_ref: (N*C_out, 1)
    # k_ref: (H*W, H_out*W)    o_ref:  (N*C_out, H_out*W)
    # Block-diagonal 1x1 conv over all batches at once: (N*C_out, N*C_in) @ (N*C_in, H*W).
    y = jnp.dot(wc_ref[...], x_ref[...], preferred_element_type=jnp.float32)
    # Bilinear upsample along H via the kron'd operator: (N*C_out, H*W) @ (H*W, H_out*W).
    up = jnp.dot(y, k_ref[...], preferred_element_type=jnp.float32)
    # Bias folded into the epilogue (rows of the interpolation matrix sum to 1).
    o_ref[...] = (up + b_ref[...]).astype(o_ref.dtype)


def _bilinear_height_matrix(h_in: int, factor: int) -> jnp.ndarray:
    """(H_out, H_in) matrix implementing PyTorch F.interpolate(mode='bilinear',
    align_corners=False) along the height axis (width scale factor is 1)."""
    h_out = h_in * factor
    scale = h_in / h_out
    src = (jnp.arange(h_out, dtype=jnp.float32) + 0.5) * scale - 0.5
    src = jnp.clip(src, 0.0, float(h_in - 1))
    h0 = jnp.floor(src).astype(jnp.int32)
    h1 = jnp.minimum(h0 + 1, h_in - 1)
    lam = src - h0.astype(jnp.float32)
    rows = jnp.arange(h_out)
    m = jnp.zeros((h_out, h_in), jnp.float32)
    m = m.at[rows, h0].add(1.0 - lam)
    m = m.at[rows, h1].add(lam)
    return m


def uppool2d(x, weight, bias, time_resample_factor):
    """x: (N, C_in, H, W) f32; weight: (C_out, C_in); bias: (C_out,)."""
    n, c_in, h, w = x.shape
    c_out = weight.shape[0]
    h_out = h * time_resample_factor
    hw = h * w
    hw_out = h_out * w

    # Contiguous reshape only (no transpose): rows are indexed (n, c), lanes are (h, t).
    x2 = x.reshape(n * c_in, hw)

    # Block-diagonal conv operator over the batch: Wc[(n,o), (n',c)] = delta_{nn'} W[o,c].
    wc = jnp.kron(jnp.eye(n, dtype=jnp.float32), weight.astype(jnp.float32))

    # Upsample operator acting on the flattened (H*W) lane axis:
    #   out[row, p*W + t] = sum_h M[p, h] * y[row, h*W + t]   ->   K = kron(M, I_W)^T
    m = _bilinear_height_matrix(h, time_resample_factor)                  # (H_out, H)
    k = jnp.kron(m, jnp.eye(w, dtype=jnp.float32)).T                      # (H*W, H_out*W)

    # Bias per output row (n, o): tile across the batch.
    b_rows = jnp.tile(bias.astype(jnp.float32), n).reshape(n * c_out, 1)

    flops = 2 * (n * c_out) * (n * c_in) * hw + 2 * (n * c_out) * hw * hw_out
    bytes_accessed = 4 * (n * c_in * hw + n * c_out * hw_out
                          + (n * c_out) * (n * c_in) + n * c_out + hw * hw_out)
    cost = pl.CostEstimate(flops=flops, transcendentals=0,
                           bytes_accessed=bytes_accessed)

    out_flat = pl.pallas_call(
        _uppool2d_kernel,
        out_shape=jax.ShapeDtypeStruct((n * c_out, hw_out), jnp.float32),
        grid=(1,),
        in_specs=[
            pl.BlockSpec((n * c_in, hw), lambda i: (0, 0)),
            pl.BlockSpec((n * c_out, n * c_in), lambda i: (0, 0)),
            pl.BlockSpec((n * c_out, 1), lambda i: (0, 0)),
            pl.BlockSpec((hw, hw_out), lambda i: (0, 0)),
        ],
        out_specs=pl.BlockSpec((n * c_out, hw_out), lambda i: (0, 0)),
        compiler_params=pltpu.CompilerParams(dimension_semantics=("arbitrary",)),
        cost_estimate=cost,
    )(x2, wc, b_rows, k)

    # Back to NCHW outside the kernel (free contiguous reshape, no in-kernel relayout).
    return out_flat.reshape(n, c_out, h_out, w)


if __name__ == "__main__":
    # Small shapes consistent with the module: in_channels=8, r=2 -> out_channels=4.
    N, C_IN, H, W = 2, 8, 16, 16
    R = 2
    C_OUT = C_IN // R

    key = jax.random.PRNGKey(0)
    kx, kw, kb = jax.random.split(key, 3)
    x = jax.random.normal(kx, (N, C_IN, H, W), jnp.float32)
    # Deterministic synthetic Conv2d(1x1) parameters (weight shape (C_out, C_in, 1, 1) squeezed).
    weight = jax.random.normal(kw, (C_OUT, C_IN), jnp.float32) * 0.1
    bias = jax.random.normal(kb, (C_OUT,), jnp.float32) * 0.1

    out = uppool2d(x, weight, bias, R)
    out = jax.block_until_ready(out)

    # Pure-JAX reference for sanity.
    y_ref = jnp.einsum("oc,nchw->nohw", weight, x) + bias[None, :, None, None]
    m_ref = _bilinear_height_matrix(H, R)
    ref = jnp.einsum("ph,nohw->nopw", m_ref, y_ref)

    assert out.shape == (N, C_OUT, H * R, W), out.shape
    assert jnp.allclose(out, ref, atol=1e-4, rtol=1e-5)
    print("KERNEL_OK")
</pallas_src>

<mosaic_0001>
module attributes {stable_mosaic.version = 11 : i64} {
  func.func @_uppool2d_kernel(%arg0: i32, %arg1: memref<16x256xf32, #tpu.memory_space<vmem>>, %arg2: memref<8x16xf32, #tpu.memory_space<vmem>>, %arg3: memref<8x1xf32, #tpu.memory_space<vmem>>, %arg4: memref<256x512xf32, #tpu.memory_space<vmem>>, %arg5: memref<8x512xf32, #tpu.memory_space<vmem>>) attributes {dimension_semantics = [#tpu.dimension_semantics<arbitrary>], iteration_bounds = array<i64: 1>, scalar_prefetch = 0 : i64, scratch_operands = 0 : i64, tpu.core_type = #tpu.core_type<tc>, window_params = [{pipeline_mode = #tpu.pipeline_mode<synchronous>, transform_indices = @transform_0, window_bounds = array<i64: 16, 256>}, {pipeline_mode = #tpu.pipeline_mode<synchronous>, transform_indices = @transform_1, window_bounds = array<i64: 8, 16>}, {pipeline_mode = #tpu.pipeline_mode<synchronous>, transform_indices = @transform_2, window_bounds = array<i64: 8, 1>}, {pipeline_mode = #tpu.pipeline_mode<synchronous>, transform_indices = @transform_3, window_bounds = array<i64: 256, 512>}, {pipeline_mode = #tpu.pipeline_mode<synchronous>, transform_indices = @transform_4, window_bounds = array<i64: 8, 512>}]} {
    %c0 = arith.constant 0 : index
    %c0_0 = arith.constant 0 : index
    %0 = vector.load %arg2[%c0, %c0_0] : memref<8x16xf32, #tpu.memory_space<vmem>>, vector<8x16xf32>
    %c0_1 = arith.constant 0 : index
    %c0_2 = arith.constant 0 : index
    %1 = vector.load %arg1[%c0_1, %c0_2] : memref<16x256xf32, #tpu.memory_space<vmem>>, vector<16x256xf32>
    %cst = arith.constant dense<0.000000e+00> : vector<8x256xf32>
    %2 = tpu.matmul %0, %1, %cst {dimension_numbers = #tpu.dot_dimension_numbers<[1], [0], [0], [1], [0, 0, 1, 1], [], []>} : vector<8x16xf32>, vector<16x256xf32>, vector<8x256xf32> -> vector<8x256xf32>
    %c0_3 = arith.constant 0 : index
    %c0_4 = arith.constant 0 : index
    %3 = vector.load %arg4[%c0_3, %c0_4] : memref<256x512xf32, #tpu.memory_space<vmem>>, vector<256x512xf32>
    %cst_5 = arith.constant dense<0.000000e+00> : vector<8x512xf32>
    %4 = tpu.matmul %2, %3, %cst_5 {dimension_numbers = #tpu.dot_dimension_numbers<[1], [0], [0], [1], [0, 0, 1, 1], [], []>} : vector<8x256xf32>, vector<256x512xf32>, vector<8x512xf32> -> vector<8x512xf32>
    %c0_6 = arith.constant 0 : index
    %c0_7 = arith.constant 0 : index
    %5 = vector.load %arg3[%c0_6, %c0_7] : memref<8x1xf32, #tpu.memory_space<vmem>>, vector<8x1xf32>
    %6 = vector.broadcast %5 : vector<8x1xf32> to vector<8x512xf32>
    %7 = arith.addf %4, %6 : vector<8x512xf32>
    %c0_8 = arith.constant 0 : index
    %c0_9 = arith.constant 0 : index
    %8 = vector.load %arg5[%c0_8, %c0_9] : memref<8x512xf32, #tpu.memory_space<vmem>>, vector<8x512xf32>
    tpu.vector_store %arg5[%c0_8, %c0_9], %7 {strides = array<i32>} : memref<8x512xf32, #tpu.memory_space<vmem>>, vector<8x512xf32>,
    return
  }
  func.func @transform_0(%arg0: i32) -> (i32, i32) {
    %c0_i32 = arith.constant 0 : i32
    %c0_i32_0 = arith.constant 0 : i32
    %c0_i32_1 = arith.constant 0 : i32
    return %c0_i32, %c0_i32_0 : i32, i32
  }
  func.func @transform_1(%arg0: i32) -> (i32, i32) {
    %c0_i32 = arith.constant 0 : i32
    %c0_i32_0 = arith.constant 0 : i32
    %c0_i32_1 = arith.constant 0 : i32
    return %c0_i32, %c0_i32_0 : i32, i32
  }
  func.func @transform_2(%arg0: i32) -> (i32, i32) {
    %c0_i32 = arith.constant 0 : i32
    %c0_i32_0 = arith.constant 0 : i32
    %c0_i32_1 = arith.constant 0 : i32
    return %c0_i32, %c0_i32_0 : i32, i32
  }
  func.func @transform_3(%arg0: i32) -> (i32, i32) {
    %c0_i32 = arith.constant 0 : i32
    %c0_i32_0 = arith.constant 0 : i32
    %c0_i32_1 = arith.constant 0 : i32
    return %c0_i32, %c0_i32_0 : i32, i32
  }
  func.func @transform_4(%arg0: i32) -> (i32, i32) {
    %c0_i32 = arith.constant 0 : i32
    %c0_i32_0 = arith.constant 0 : i32
    %c0_i32_1 = arith.constant 0 : i32
    return %c0_i32, %c0_i32_0 : i32, i32
  }
}

</mosaic_0001>

<bundles_post_ra>
// kernel: tpu_custom_call.1
= control target key start
LH: loop header
LB: loop body
LE: loop exit
PB: predicated region body
PF: predicated region fallthrough
CT: control target
= control target key end

     0   :  { %9 = vsyncpa [#allocation3], 0  ;;  %s548_s0 = inlined_call_operand.hbm [shape: f32[16,256], index: 0, kind: input, shape index: {}]   ;;  %s549_s1 = inlined_call_operand.vmem [shape: f32[8,16], index: 1, kind: input, shape index: {}]   ;;  %s550_s2 = inlined_call_operand.vmem [shape: f32[8,1], index: 2, kind: input, shape index: {}]   ;;  %s551_s3 = inlined_call_operand.hbm [shape: f32[256,512], index: 3, kind: input, shape index: {}]   ;;  %s552_s4 = inlined_call_operand.hbm [shape: f32[8,512], index: 4, kind: output, shape index: {}]  }
   0x1   :  { %10 = vsyncpa [#allocation6], 0 }
   0x2   :  { %11 = vsyncpa [#allocation4], 0  ;;  %s499_s15 = smov [#allocation2]  }
   0x3   :  { %s17_s16 = sshll.u32 %s499_s15, 4  ;;  %s18_s16 = int_to_ptr.vmem [resolvable:$true] %s17_s16 }
   0x4   :  { %s441_s17 = scalar_lea.vmem %s18_s16, 512  ;;  %p446_p1 = scmp.lt.s32.totalorder %s18_s16, %s18_s16 }
   0x5   :  { %p442_p0 = scmp.ne.s32.totalorder %s18_s16, %s441_s17  ;;  %p447_p2 = scmp.lt.s32.totalorder %s441_s17, %s441_s17 }
   0x7   :  { %p448_p3 = por %p447_p2, %p446_p1 }
   0x9   :  { %p449_p4 = pnand %p448_p3, %p442_p0 }
   0xb   :  { %452 = shalt.err (!%p449_p4)
}
   0xc   :  { %s500_s18 = smov 256   ;;  %s501_s19 = smov 16  }
   0xd   :  { %23 = dma.hbm_to_vmem [thread:$0]  %s548_s0, 512, %s18_s16, [#allocation3], %s500_s18, %s500_s18, %s501_s19  }
   0xe   :  { %s502_s22 = smov [#allocation5]  }
   0xf   :  { %s33_s23 = sshll.u32 %s502_s22, 4  ;;  %s34_s23 = int_to_ptr.vmem [resolvable:$true] %s33_s23 }
  0x10   :  { %s461_s24 = scalar_lea.vmem %s34_s23, 16384  ;;  %p466_p6 = scmp.lt.s32.totalorder %s34_s23, %s34_s23 }
  0x11   :  { %p462_p5 = scmp.ne.s32.totalorder %s34_s23, %s461_s24  ;;  %p467_p7 = scmp.lt.s32.totalorder %s461_s24, %s461_s24 }
  0x13   :  { %p468_p8 = por %p467_p7, %p466_p6 }
  0x15   :  { %p469_p9 = pnand %p468_p8, %p462_p5 }
  0x17   :  { %472 = shalt.err (!%p469_p9)
}
  0x18   :  { %s503_s25 = smov 512   ;;  %s504_s26 = smov 32  }
  0x19   :  { %39 = dma.hbm_to_vmem [thread:$0]  %s551_s3, 16384, %s34_s23, [#allocation6], %s503_s25, %s503_s25, %s504_s26  }
  0x1a   :  { %493 = dma.done.wait [#allocation3], 512  }
  0x1b   :  { %494 = vsyncadd [#allocation3], 4294966784 }
  0x1c   :  { %495 = dma.done.wait [#allocation6], 16384  }
  0x1d   :  { %496 = vsyncadd [#allocation6], 4294950912  ;;  %v505_v0 = vmov 0.0   ;;  %v50_v1 = vld [vmem:[#allocation2 + $0x18] sm:$0xff]  ;;  %v49_v2 = vld [vmem:[#allocation2 + $0x10] sm:$0xff]  ;;  %vm51_vm0 = vcmask 130048  }
  0x1e   :  { %119 = vmatprep.mubr.f32.mxu0 %v505_v0  ;;  %v48_v3 = vld [vmem:[#allocation2 + $0x8] sm:$0xff]  ;;  %83 = vmatprep.subr.mxu0 %v50_v1  ;;  %v47_v4 = vld [vmem:[#allocation2] sm:$0xff]  ;;  %v189_v7 = vld [vmem:[#allocation5 + $0x1f8] sm:$0xff]  ;;  %s507_s30 = smov [#allocation7]  }
  0x1f   :  { %v187_v5 = vld [vmem:[#allocation5 + $0x1e8] sm:$0xff]  ;;  %84 = vmatpush1.msra.mxu0 %v49_v2  ;;  %v46_v6 = vld [vmem:[%s549_s1] sm:$0xff]  ;;  %v188_v9 = vld [vmem:[#allocation5 + $0x1f0] sm:$0xff]  ;;  %s412_s5 = sshll.u32 %s507_s30, 4  ;;  %s413_s5 = int_to_ptr.vmem [resolvable:$true] %s412_s5 }
  0x20   :  { %260 = vmatprep.subr.mxu1 %v187_v5  ;;  %v186_v8 = vld [vmem:[#allocation5 + $0x1e0] sm:$0xff]  ;;  %85 = vmatprep.subr.mxu0 %v48_v3  ;;  %v183_v10 = vld [vmem:[#allocation5 + $0x1c8] sm:$0xff]  ;;  %v185_v12 = vld [vmem:[#allocation5 + $0x1d8] sm:$0xff]  ;;  %p478_p11 = scmp.lt.s32.totalorder %s413_s5, %s413_s5 }
  0x21   :  { %261 = vmatpush1.msra.mxu1 %v186_v8  ;;  %v182_v11 = vld [vmem:[#allocation5 + $0x1c0] sm:$0xff]  ;;  %86 = vmatpush1.msra.mxu0 %v47_v4  ;;  %v179_v13 = vld [vmem:[#allocation5 + $0x1a8] sm:$0xff]  ;;  %v184_v14 = vld [vmem:[#allocation5 + $0x1d0] sm:$0xff] }
  0x22   :  { %262 = vmatprep.subr.mxu1 %v183_v10  ;;  %422 = vmatmul.mubr.msk.f32.vlgmr.msra.gmra.mxu0 %vm51_vm0, %v46_v6  ;;  %v178_v15 = vld [vmem:[#allocation5 + $0x1a0] sm:$0xff]  ;;  %v181_v16 = vld [vmem:[#allocation5 + $0x1b8] sm:$0xff]  ;;  %v175_v17 = vld [vmem:[#allocation5 + $0x188] sm:$0xff] }
  0x23   :  { %331 = vmatprep.subr.mxu0 %v189_v7  ;;  %263 = vmatpush1.msra.mxu1 %v182_v11  ;;  %v180_v18 = vld [vmem:[#allocation5 + $0x1b0] sm:$0xff]  ;;  %v174_v19 = vld [vmem:[#allocation5 + $0x180] sm:$0xff]  ;;  %v177_v20 = vld [vmem:[#allocation5 + $0x198] sm:$0xff] }
  0x24   :  { %332 = vmatpush1.msra.mxu0 %v188_v9  ;;  %264 = vmatprep.subr.mxu1 %v179_v13  ;;  %v171_v21 = vld [vmem:[#allocation5 + $0x168] sm:$0xff]  ;;  %v176_v22 = vld [vmem:[#allocation5 + $0x190] sm:$0xff]  ;;  %v170_v23 = vld [vmem:[#allocation5 + $0x160] sm:$0xff] }
  0x25   :  { %333 = vmatprep.subr.mxu0 %v185_v12  ;;  %265 = vmatpush1.msra.mxu1 %v178_v15  ;;  %v173_v24 = vld [vmem:[#allocation5 + $0x178] sm:$0xff]  ;;  %v167_v25 = vld [vmem:[#allocation5 + $0x148] sm:$0xff]  ;;  %v172_v26 = vld [vmem:[#allocation5 + $0x170] sm:$0xff] }
  0x26   :  { %334 = vmatpush1.msra.mxu0 %v184_v14  ;;  %266 = vmatprep.subr.mxu1 %v175_v17  ;;  %v166_v27 = vld [vmem:[#allocation5 + $0x140] sm:$0xff]  ;;  %v169_v28 = vld [vmem:[#allocation5 + $0x158] sm:$0xff]  ;;  %v163_v29 = vld [vmem:[#allocation5 + $0x128] sm:$0xff] }
  0x27   :  { %335 = vmatprep.subr.mxu0 %v181_v16  ;;  %267 = vmatpush1.msra.mxu1 %v174_v19  ;;  %v168_v30 = vld [vmem:[#allocation5 + $0x150] sm:$0xff]  ;;  %v162_v31 = vld [vmem:[#allocation5 + $0x120] sm:$0xff]  ;;  %v165_v32 = vld [vmem:[#allocation5 + $0x138] sm:$0xff] }
  0x28   :  { %336 = vmatpush1.msra.mxu0 %v180_v18  ;;  %268 = vmatprep.subr.mxu1 %v171_v21  ;;  %v159_v33 = vld [vmem:[#allocation5 + $0x108] sm:$0xff]  ;;  %v164_v34 = vld [vmem:[#allocation5 + $0x130] sm:$0xff]  ;;  %v158_v35 = vld [vmem:[#allocation5 + $0x100] sm:$0xff] }
  0x29   :  { %337 = vmatprep.subr.mxu0 %v177_v20  ;;  %269 = vmatpush1.msra.mxu1 %v170_v23  ;;  %v161_v36 = vld [vmem:[#allocation5 + $0x118] sm:$0xff]  ;;  %v155_v37 = vld [vmem:[#allocation5 + $0xe8] sm:$0xff]  ;;  %v160_v38 = vld [vmem:[#allocation5 + $0x110] sm:$0xff] }
  0x2a   :  { %338 = vmatpush1.msra.mxu0 %v176_v22  ;;  %270 = vmatprep.subr.mxu1 %v167_v25  ;;  %v154_v39 = vld [vmem:[#allocation5 + $0xe0] sm:$0xff]  ;;  %v157_v40 = vld [vmem:[#allocation5 + $0xf8] sm:$0xff]  ;;  %v151_v41 = vld [vmem:[#allocation5 + $0xc8] sm:$0xff] }
  0x2b   :  { %339 = vmatprep.subr.mxu0 %v173_v24  ;;  %271 = vmatpush1.msra.mxu1 %v166_v27  ;;  %v156_v42 = vld [vmem:[#allocation5 + $0xf0] sm:$0xff]  ;;  %v150_v43 = vld [vmem:[#allocation5 + $0xc0] sm:$0xff]  ;;  %v153_v44 = vld [vmem:[#allocation5 + $0xd8] sm:$0xff] }
  0x2c   :  { %340 = vmatpush1.msra.mxu0 %v172_v26  ;;  %272 = vmatprep.subr.mxu1 %v163_v29  ;;  %v147_v45 = vld [vmem:[#allocation5 + $0xa8] sm:$0xff]  ;;  %v152_v46 = vld [vmem:[#allocation5 + $0xd0] sm:$0xff]  ;;  %v146_v47 = vld [vmem:[#allocation5 + $0xa0] sm:$0xff] }
  0x2d   :  { %341 = vmatprep.subr.mxu0 %v169_v28  ;;  %273 = vmatpush1.msra.mxu1 %v162_v31  ;;  %v149_v48 = vld [vmem:[#allocation5 + $0xb8] sm:$0xff]  ;;  %v143_v49 = vld [vmem:[#allocation5 + $0x88] sm:$0xff]  ;;  %v148_v50 = vld [vmem:[#allocation5 + $0xb0] sm:$0xff] }
  0x2e   :  { %342 = vmatpush1.msra.mxu0 %v168_v30  ;;  %274 = vmatprep.subr.mxu1 %v159_v33  ;;  %v142_v51 = vld [vmem:[#allocation5 + $0x80] sm:$0xff]  ;;  %v145_v52 = vld [vmem:[#allocation5 + $0x98] sm:$0xff]  ;;  %v139_v53 = vld [vmem:[#allocation5 + $0x68] sm:$0xff] }
  0x2f   :  { %343 = vmatprep.subr.mxu0 %v165_v32  ;;  %275 = vmatpush1.msra.mxu1 %v158_v35  ;;  %v144_v54 = vld [vmem:[#allocation5 + $0x90] sm:$0xff]  ;;  %v138_v55 = vld [vmem:[#allocation5 + $0x60] sm:$0xff]  ;;  %v141_v56 = vld [vmem:[#allocation5 + $0x78] sm:$0xff] }
  0x30   :  { %344 = vmatpush1.msra.mxu0 %v164_v34  ;;  %276 = vmatprep.subr.mxu1 %v155_v37  ;;  %v135_v57 = vld [vmem:[#allocation5 + $0x48] sm:$0xff]  ;;  %v140_v58 = vld [vmem:[#allocation5 + $0x70] sm:$0xff]  ;;  %v134_v59 = vld [vmem:[#allocation5 + $0x40] sm:$0xff] }
  0x31   :  { %345 = vmatprep.subr.mxu0 %v161_v36  ;;  %277 = vmatpush1.msra.mxu1 %v154_v39  ;;  %v137_v60 = vld [vmem:[#allocation5 + $0x58] sm:$0xff]  ;;  %v131_v61 = vld [vmem:[#allocation5 + $0x28] sm:$0xff]  ;;  %v136_v62 = vld [vmem:[#allocation5 + $0x50] sm:$0xff] }
  0x32   :  { %346 = vmatpush1.msra.mxu0 %v160_v38  ;;  %278 = vmatprep.subr.mxu1 %v151_v41  ;;  %v130_v63 = vld [vmem:[#allocation5 + $0x20] sm:$0xff]  ;;  %v133_v0 = vld [vmem:[#allocation5 + $0x38] sm:$0xff]  ;;  %v127_v1 = vld [vmem:[#allocation5 + $0x8] sm:$0xff] }
  0x33   :  { %347 = vmatprep.subr.mxu0 %v157_v40  ;;  %279 = vmatpush1.msra.mxu1 %v150_v43  ;;  %v132_v2 = vld [vmem:[#allocation5 + $0x30] sm:$0xff]  ;;  %v126_v3 = vld [vmem:[#allocation5] sm:$0xff]  ;;  %v129_v4 = vld [vmem:[#allocation5 + $0x18] sm:$0xff] }
  0x34   :  { %348 = vmatpush1.msra.mxu0 %v156_v42  ;;  %280 = vmatprep.subr.mxu1 %v147_v45  ;;  %v251_v5 = vld [vmem:[#allocation5 + $0x3e8] sm:$0xff]  ;;  %v128_v6 = vld [vmem:[#allocation5 + $0x10] sm:$0xff]  ;;  %v250_v7 = vld [vmem:[#allocation5 + $0x3e0] sm:$0xff] }
  0x35   :  { %349 = vmatprep.subr.mxu0 %v153_v44  ;;  %281 = vmatpush1.msra.mxu1 %v146_v47  ;;  %v253_v8 = vld [vmem:[#allocation5 + $0x3f8] sm:$0xff]  ;;  %v247_v9 = vld [vmem:[#allocation5 + $0x3c8] sm:$0xff]  ;;  %v252_v10 = vld [vmem:[#allocation5 + $0x3f0] sm:$0xff] }
  0x36   :  { %350 = vmatpush1.msra.mxu0 %v152_v46  ;;  %282 = vmatprep.subr.mxu1 %v143_v49  ;;  %v246_v11 = vld [vmem:[#allocation5 + $0x3c0] sm:$0xff]  ;;  %v249_v12 = vld [vmem:[#allocation5 + $0x3d8] sm:$0xff]  ;;  %v243_v13 = vld [vmem:[#allocation5 + $0x3a8] sm:$0xff] }
  0x37   :  { %351 = vmatprep.subr.mxu0 %v149_v48  ;;  %283 = vmatpush1.msra.mxu1 %v142_v51  ;;  %v248_v14 = vld [vmem:[#allocation5 + $0x3d0] sm:$0xff]  ;;  %v242_v15 = vld [vmem:[#allocation5 + $0x3a0] sm:$0xff]  ;;  %v245_v16 = vld [vmem:[#allocation5 + $0x3b8] sm:$0xff] }
  0x38   :  { %352 = vmatpush1.msra.mxu0 %v148_v50  ;;  %284 = vmatprep.subr.mxu1 %v139_v53  ;;  %v239_v17 = vld [vmem:[#allocation5 + $0x388] sm:$0xff]  ;;  %v244_v18 = vld [vmem:[#allocation5 + $0x3b0] sm:$0xff]  ;;  %v238_v19 = vld [vmem:[#allocation5 + $0x380] sm:$0xff] }
  0x39   :  { %353 = vmatprep.subr.mxu0 %v145_v52  ;;  %285 = vmatpush1.msra.mxu1 %v138_v55  ;;  %v241_v20 = vld [vmem:[#allocation5 + $0x398] sm:$0xff]  ;;  %v235_v21 = vld [vmem:[#allocation5 + $0x368] sm:$0xff]  ;;  %v240_v22 = vld [vmem:[#allocation5 + $0x390] sm:$0xff] }
  0x3a   :  { %354 = vmatpush1.msra.mxu0 %v144_v54  ;;  %286 = vmatprep.subr.mxu1 %v135_v57  ;;  %v234_v23 = vld [vmem:[#allocation5 + $0x360] sm:$0xff]  ;;  %v237_v24 = vld [vmem:[#allocation5 + $0x378] sm:$0xff]  ;;  %v231_v25 = vld [vmem:[#allocation5 + $0x348] sm:$0xff] }
  0x3b   :  { %355 = vmatprep.subr.mxu0 %v141_v56  ;;  %287 = vmatpush1.msra.mxu1 %v134_v59  ;;  %v236_v26 = vld [vmem:[#allocation5 + $0x370] sm:$0xff]  ;;  %v230_v27 = vld [vmem:[#allocation5 + $0x340] sm:$0xff]  ;;  %v233_v28 = vld [vmem:[#allocation5 + $0x358] sm:$0xff] }
  0x3c   :  { %356 = vmatpush1.msra.mxu0 %v140_v58  ;;  %288 = vmatprep.subr.mxu1 %v131_v61  ;;  %v227_v29 = vld [vmem:[#allocation5 + $0x328] sm:$0xff]  ;;  %v232_v30 = vld [vmem:[#allocation5 + $0x350] sm:$0xff]  ;;  %v226_v31 = vld [vmem:[#allocation5 + $0x320] sm:$0xff] }
  0x3d   :  { %357 = vmatprep.subr.mxu0 %v137_v60  ;;  %289 = vmatpush1.msra.mxu1 %v130_v63  ;;  %v229_v32 = vld [vmem:[#allocation5 + $0x338] sm:$0xff]  ;;  %v223_v33 = vld [vmem:[#allocation5 + $0x308] sm:$0xff]  ;;  %v228_v34 = vld [vmem:[#allocation5 + $0x330] sm:$0xff] }
  0x3e   :  { %358 = vmatpush1.msra.mxu0 %v136_v62  ;;  %290 = vmatprep.subr.mxu1 %v127_v1  ;;  %v222_v35 = vld [vmem:[#allocation5 + $0x300] sm:$0xff]  ;;  %v225_v36 = vld [vmem:[#allocation5 + $0x318] sm:$0xff]  ;;  %v219_v37 = vld [vmem:[#allocation5 + $0x2e8] sm:$0xff] }
  0x3f   :  { %359 = vmatprep.subr.mxu0 %v133_v0  ;;  %291 = vmatpush1.msra.mxu1 %v126_v3  ;;  %v224_v38 = vld [vmem:[#allocation5 + $0x310] sm:$0xff]  ;;  %v218_v39 = vld [vmem:[#allocation5 + $0x2e0] sm:$0xff]  ;;  %v221_v40 = vld [vmem:[#allocation5 + $0x2f8] sm:$0xff] }
  0x40   :  { %360 = vmatpush1.msra.mxu0 %v132_v2  ;;  %292 = vmatprep.subr.mxu1 %v251_v5  ;;  %v215_v41 = vld [vmem:[#allocation5 + $0x2c8] sm:$0xff]  ;;  %v220_v42 = vld [vmem:[#allocation5 + $0x2f0] sm:$0xff]  ;;  %v214_v43 = vld [vmem:[#allocation5 + $0x2c0] sm:$0xff] }
  0x41   :  { %361 = vmatprep.subr.mxu0 %v129_v4  ;;  %293 = vmatpush2.msra.mxu1 %v250_v7  ;;  %v217_v44 = vld [vmem:[#allocation5 + $0x2d8] sm:$0xff]  ;;  %v211_v45 = vld [vmem:[#allocation5 + $0x2a8] sm:$0xff]  ;;  %v216_v46 = vld [vmem:[#allocation5 + $0x2d0] sm:$0xff]  ;;  %v506_v7 = vmov 0  }
  0x42   :  { %362 = vmatpush1.msra.mxu0 %v128_v6  ;;  %294 = vmatprep.subr.mxu1 %v247_v9  ;;  %v210_v47 = vld [vmem:[#allocation5 + $0x2a0] sm:$0xff]  ;;  %v213_v48 = vld [vmem:[#allocation5 + $0x2b8] sm:$0xff]  ;;  %v207_v49 = vld [vmem:[#allocation5 + $0x288] sm:$0xff] }
  0x43   :  { %363 = vmatprep.subr.mxu0 %v253_v8  ;;  %295 = vmatpush2.msra.mxu1 %v246_v11  ;;  %v212_v50 = vld [vmem:[#allocation5 + $0x2b0] sm:$0xff]  ;;  %v206_v51 = vld [vmem:[#allocation5 + $0x280] sm:$0xff]  ;;  %v209_v52 = vld [vmem:[#allocation5 + $0x298] sm:$0xff] }
  0x44   :  { %364 = vmatpush2.msra.mxu0 %v252_v10  ;;  %296 = vmatprep.subr.mxu1 %v243_v13  ;;  %v203_v53 = vld [vmem:[#allocation5 + $0x268] sm:$0xff]  ;;  %v208_v54 = vld [vmem:[#allocation5 + $0x290] sm:$0xff]  ;;  %v202_v55 = vld [vmem:[#allocation5 + $0x260] sm:$0xff] }
  0x45   :  { %365 = vmatprep.subr.mxu0 %v249_v12  ;;  %297 = vmatpush2.msra.mxu1 %v242_v15  ;;  %v205_v56 = vld [vmem:[#allocation5 + $0x278] sm:$0xff]  ;;  %v199_v57 = vld [vmem:[#allocation5 + $0x248] sm:$0xff]  ;;  %v204_v58 = vld [vmem:[#allocation5 + $0x270] sm:$0xff] }
  0x46   :  { %366 = vmatpush2.msra.mxu0 %v248_v14  ;;  %298 = vmatprep.subr.mxu1 %v239_v17  ;;  %v198_v59 = vld [vmem:[#allocation5 + $0x240] sm:$0xff]  ;;  %v201_v60 = vld [vmem:[#allocation5 + $0x258] sm:$0xff]  ;;  %v200_v61 = vld [vmem:[#allocation5 + $0x250] sm:$0xff] }
  0x47   :  { %367 = vmatprep.subr.mxu0 %v245_v16  ;;  %299 = vmatpush2.msra.mxu1 %v238_v19  ;;  %v195_v62 = vld [vmem:[#allocation5 + $0x228] sm:$0xff]  ;;  %v197_v63 = vld [vmem:[#allocation5 + $0x238] sm:$0xff]  ;;  %v194_v0 = vld [vmem:[#allocation5 + $0x220] sm:$0xff] }
  0x48   :  { %368 = vmatpush2.msra.mxu0 %v244_v18  ;;  %300 = vmatprep.subr.mxu1 %v235_v21  ;;  %v196_v1 = vld [vmem:[#allocation5 + $0x230] sm:$0xff]  ;;  %v191_v2 = vld [vmem:[#allocation5 + $0x208] sm:$0xff]  ;;  %v193_v3 = vld [vmem:[#allocation5 + $0x218] sm:$0xff] }
  0x49   :  { %369 = vmatprep.subr.mxu0 %v241_v20  ;;  %301 = vmatpush2.msra.mxu1 %v234_v23  ;;  %v190_v4 = vld [vmem:[#allocation5 + $0x200] sm:$0xff]  ;;  %v192_v5 = vld [vmem:[#allocation5 + $0x210] sm:$0xff] }
  0x4a   :  { %370 = vmatpush2.msra.mxu0 %v240_v22  ;;  %302 = vmatprep.subr.mxu1 %v231_v25  ;;  %v254_v6 = vld [vmem:[%s550_s2] sm:$0xff]  ;;  %s473_s2 = scalar_lea.vmem %s413_s5, 512 }
  0x4b   :  { %371 = vmatprep.subr.mxu0 %v237_v24  ;;  %303 = vmatpush2.msra.mxu1 %v230_v27  ;;  %p474_p10 = scmp.ne.s32.totalorder %s413_s5, %s473_s2  ;;  %p479_p12 = scmp.lt.s32.totalorder %s473_s2, %s473_s2 }
  0x4c   :  { %372 = vmatpush2.msra.mxu0 %v236_v26  ;;  %304 = vmatprep.subr.mxu1 %v227_v29 }
  0x4d   :  { %373 = vmatprep.subr.mxu0 %v233_v28  ;;  %305 = vmatpush2.msra.mxu1 %v226_v31  ;;  %p480_p13 = por %p479_p12, %p478_p11 }
  0x4e   :  { %374 = vmatpush2.msra.mxu0 %v232_v30  ;;  %306 = vmatprep.subr.mxu1 %v223_v33 }
  0x4f   :  { %375 = vmatprep.subr.mxu0 %v229_v32  ;;  %307 = vmatpush2.msra.mxu1 %v222_v35  ;;  %p481_p0 = pnand %p480_p13, %p474_p10 }
  0x50   :  { %376 = vmatpush2.msra.mxu0 %v228_v34  ;;  %308 = vmatprep.subr.mxu1 %v219_v37 }
  0x51   :  { %377 = vmatprep.subr.mxu0 %v225_v36  ;;  %309 = vmatpush2.msra.mxu1 %v218_v39 }
  0x52   :  { %378 = vmatpush2.msra.mxu0 %v224_v38  ;;  %310 = vmatprep.subr.mxu1 %v215_v41 }
  0x53   :  { %379 = vmatprep.subr.mxu0 %v221_v40  ;;  %311 = vmatpush2.msra.mxu1 %v214_v43 }
  0x54   :  { %380 = vmatpush2.msra.mxu0 %v220_v42  ;;  %312 = vmatprep.subr.mxu1 %v211_v45 }
  0x55   :  { %381 = vmatprep.subr.mxu0 %v217_v44  ;;  %313 = vmatpush2.msra.mxu1 %v210_v47 }
  0x56   :  { %382 = vmatpush2.msra.mxu0 %v216_v46  ;;  %314 = vmatprep.subr.mxu1 %v207_v49 }
  0x57   :  { %383 = vmatprep.subr.mxu0 %v213_v48  ;;  %315 = vmatpush2.msra.mxu1 %v206_v51 }
  0x58   :  { %384 = vmatpush2.msra.mxu0 %v212_v50  ;;  %316 = vmatprep.subr.mxu1 %v203_v53 }
  0x59   :  { %385 = vmatprep.subr.mxu0 %v209_v52  ;;  %317 = vmatpush2.msra.mxu1 %v202_v55 }
  0x5a   :  { %386 = vmatpush2.msra.mxu0 %v208_v54  ;;  %318 = vmatprep.subr.mxu1 %v199_v57 }
  0x5b   :  { %387 = vmatprep.subr.mxu0 %v205_v56  ;;  %319 = vmatpush2.msra.mxu1 %v198_v59 }
  0x5c   :  { %388 = vmatpush2.msra.mxu0 %v204_v58  ;;  %320 = vmatprep.subr.mxu1 %v195_v62 }
  0x5d   :  { %389 = vmatprep.subr.mxu0 %v201_v60  ;;  %321 = vmatpush2.msra.mxu1 %v194_v0 }
  0x5e   :  { %390 = vmatpush2.msra.mxu0 %v200_v61  ;;  %322 = vmatprep.subr.mxu1 %v191_v2 }
  0x5f   :  { %391 = vmatprep.subr.mxu0 %v197_v63  ;;  %323 = vmatpush2.msra.mxu1 %v190_v4 }
  0x60   :  { %392 = vmatpush2.msra.mxu0 %v196_v1  ;;  %432 = vset.pattern.permute.xlu0 %v506_v7 }
  0x61   :  { %393 = vmatprep.subr.mxu0 %v193_v3  ;;  %257 = vperm.xlu0 %432, %v254_v6  }
  0x62   :  { %394 = vmatpush2.msra.mxu0 %v192_v5 }
  0xdc   :  { %v258_v10 = vpop.permute.xlu0 %257 }
  0xe2   :  { %v121_v8 = vpop.f32.mrf.mxu0 }
  0xe4   :  { %v123_v9 = vpop.f32.mrf.mxu0 }
  0xe5   :  { %324 = vmatprep.mubr.f32.mxu1 %v123_v9  ;;  %395 = vmatprep.mubr.f32.mxu0 %v123_v9 }
  0xe6   :  { %325 = vmatmul.mubr.f32.vlgmr.msra.gmra.mxu1 %v121_v8  ;;  %396 = vmatmul.mubr.f32.vlgmr.msra.gmra.mxu0 %v121_v8 }
 0x1a6   :  { %v326_v11 = vpop.f32.mrf.mxu1  ;;  %v397_v12 = vpop.f32.mrf.mxu0 }
 0x1a7   :  { %v327_v13 = vadd.f32 %v326_v11, %v258_v10  ;;  %v398_v14 = vadd.f32 %v397_v12, %v258_v10 }
 0x1a8   :  { %v328_v15 = vpop.f32.mrf.mxu1  ;;  %v399_v16 = vpop.f32.mrf.mxu0 }
 0x1a9   :  { %402 = vst [vmem:[#allocation7] sm:$0xff] %v327_v13  ;;  %404 = vst [vmem:[#allocation7 + $0x10] sm:$0xff] %v398_v14  ;;  %v329_v17 = vadd.f32 %v328_v15, %v258_v10  ;;  %v400_v18 = vadd.f32 %v399_v16, %v258_v10 }
 0x1ab   :  { %403 = vst [vmem:[#allocation7 + $0x8] sm:$0xff] %v329_v17  ;;  %405 = vst [vmem:[#allocation7 + $0x18] sm:$0xff] %v400_v18 }
 0x1ac   :  { %484 = shalt.err (!%p481_p0)
}
 0x1ad   :  { %415 = dma.vmem_to_hbm [thread:$0]  %s413_s5, 512, %s552_s4, [#allocation4]  }
 0x1ae   :  { %497 = dma.done.wait [#allocation4], 512  }
 0x1af   :  { %498 = vsyncadd [#allocation4], 4294966784 }
 0x1b0   :  { %419 = vsyncpa [#allocation3], 1 }
 0x1b1   :  { %420 = vsyncpa [#allocation6], 1 }
 0x1b2   :  { %421 = vsyncpa [#allocation4], 1 }

</bundles_post_ra>
